<compile_context>
chip_gen: v6e
topology: v6e:2x2x1
jax: 0.10.0
libtpu: 0.0.40
codegen_flags: <defaults>
</compile_context>

<pallas_src>
import functools
import math

import jax
import jax.numpy as jnp
from jax import lax
from jax.experimental import pallas as pl
from jax.experimental.pallas import tpu as pltpu


# ----------------------------------------------------------------------------
# Pallas kernel: fused (im2col-matmul) * scale + bias, optional SiLU
# ----------------------------------------------------------------------------
def _round_up(x, m):
    return (x + m - 1) // m * m


def _pick_tile(padded, candidates):
    for c in candidates:
        if padded % c == 0:
            return c
    return padded


def _fused_matmul_kernel(apply_silu, a_ref, w_ref, s_ref, b_ref, o_ref, acc_ref):
    # K (reduction) grid axis is axis 2; accumulate in f32 VMEM scratch.
    @pl.when(pl.program_id(2) == 0)
    def _():
        acc_ref[...] = jnp.zeros_like(acc_ref)

    acc_ref[...] += jnp.dot(a_ref[...], w_ref[...],
                            preferred_element_type=jnp.float32)

    @pl.when(pl.program_id(2) == pl.num_programs(2) - 1)
    def _():
        y = acc_ref[...] * s_ref[...] + b_ref[...]   # folded BatchNorm / bias
        if apply_silu:
            y = y * jax.nn.sigmoid(y)                # SiLU in f32
        o_ref[...] = y.astype(o_ref.dtype)


def _fused_matmul(a, wp, sp, bp, *, silu, out_dtype, cout):
    """a:(M,K) patches. wp:(Kp,Cp) bf16 pre-padded weights.
    sp/bp:(1,Cp) f32 pre-padded scale/bias.  Returns (M,cout) out_dtype."""
    M, K = a.shape
    Kp, Cp = wp.shape

    if M <= 512:
        TM = _round_up(M, 8)          # no wasteful 128-padding for tiny M
        Mp = TM
    else:
        TM = 256
        Mp = _round_up(M, TM)
    TK = _pick_tile(Kp, (512, 256, 128))
    TN = _pick_tile(Cp, (256, 128))

    ap = jnp.pad(a.astype(jnp.bfloat16), ((0, Mp - M), (0, Kp - K)))

    out_isz = jnp.dtype(out_dtype).itemsize
    cost = pl.CostEstimate(
        flops=2 * Mp * Kp * Cp,
        transcendentals=(Mp * Cp) if silu else 0,
        bytes_accessed=Mp * Kp * 2 + Kp * Cp * 2 + 2 * Cp * 4 + Mp * Cp * out_isz,
    )

    out = pl.pallas_call(
        functools.partial(_fused_matmul_kernel, silu),
        out_shape=jax.ShapeDtypeStruct((Mp, Cp), out_dtype),
        grid_spec=pltpu.PrefetchScalarGridSpec(
            num_scalar_prefetch=0,
            grid=(Mp // TM, Cp // TN, Kp // TK),
            in_specs=[
                pl.BlockSpec((TM, TK), lambda i, j, k: (i, k)),   # activations
                pl.BlockSpec((TK, TN), lambda i, j, k: (k, j)),   # weights
                pl.BlockSpec((1, TN), lambda i, j, k: (0, j)),    # BN scale
                pl.BlockSpec((1, TN), lambda i, j, k: (0, j)),    # BN bias
            ],
            out_specs=pl.BlockSpec((TM, TN), lambda i, j, k: (i, j)),
            scratch_shapes=[pltpu.VMEM((TM, TN), jnp.float32)],
        ),
        compiler_params=pltpu.CompilerParams(
            dimension_semantics=("parallel", "parallel", "arbitrary")),
        cost_estimate=cost,
    )(ap, wp, sp, bp)
    return out[:M, :cout]


@functools.partial(jax.jit,
                   static_argnames=("k", "cout", "stride", "silu", "out_dtype"))
def conv2d_fused(x, wp, sp, bp, *, k, cout, stride, silu, out_dtype):
    """x: (N,H,W,Cin) NHWC.  wp pre-padded (Kp,Cp) bf16.  'same' pad (k-1)//2."""
    x = x.astype(jnp.bfloat16)
    N, H, W, cin = x.shape
    p = (k - 1) // 2
    if p:
        x = jnp.pad(x, ((0, 0), (p, p), (p, p), (0, 0)))
    Hp, Wp = H + 2 * p, W + 2 * p
    Ho = (Hp - k) // stride + 1
    Wo = (Wp - k) // stride + 1
    if k == 1 and stride == 1:
        patches = x
    else:
        # TODO(synk): fold the k*k taps into the kernel's K grid axis instead of
        # materializing the im2col patch matrix (would cut ~k*k x HBM traffic).
        cols = []
        for dy in range(k):
            for dx in range(k):
                cols.append(x[:, dy:dy + stride * (Ho - 1) + 1:stride,
                                dx:dx + stride * (Wo - 1) + 1:stride, :])
        patches = jnp.concatenate(cols, axis=-1)          # (N,Ho,Wo,k*k*Cin)
    a = patches.reshape(N * Ho * Wo, k * k * cin)
    out = _fused_matmul(a, wp, sp, bp, silu=silu, out_dtype=out_dtype, cout=cout)
    return out.reshape(N, Ho, Wo, cout)


# ----------------------------------------------------------------------------
# Plain-JAX glue ops (pooling / upsample)
# ----------------------------------------------------------------------------
def maxpool_2x2(x):
    N, H, W, C = x.shape
    return jnp.max(x.reshape(N, H // 2, 2, W // 2, 2, C), axis=(2, 4))


def maxpool_same(x, k):
    p = k // 2
    return lax.reduce_window(x, jnp.asarray(-jnp.inf, dtype=x.dtype), lax.max,
                             (1, k, k, 1), (1, 1, 1, 1),
                             [(0, 0), (p, p), (p, p), (0, 0)])


def upsample_2x(x):
    return jnp.repeat(jnp.repeat(x, 2, axis=1), 2, axis=2)


# ----------------------------------------------------------------------------
# Deterministic parameter init + module mirrors
# ----------------------------------------------------------------------------
class _KeyGen:
    def __init__(self, seed=0):
        self._key = jax.random.PRNGKey(seed)

    def __call__(self):
        self._key, sub = jax.random.split(self._key)
        return sub


def _pad_params(w2d, scale, bias, K, cout):
    Kp = _round_up(K, 128)
    Cp = _round_up(cout, 128)
    wp = jnp.pad(w2d, ((0, Kp - K), (0, Cp - cout))).astype(jnp.bfloat16)
    sp = jnp.pad(scale.reshape(1, cout), ((0, 0), (0, Cp - cout)))
    bp = jnp.pad(bias.reshape(1, cout), ((0, 0), (0, Cp - cout)))
    return wp, sp, bp


class CBS:  # Conv2d(bias=False) + BatchNorm2d (eval, folded) + SiLU
    def __init__(self, kg, cin, cout, k, s):
        self.k, self.s, self.cout = k, s, cout
        std = 0.5 / math.sqrt(cin * k * k)
        w = jax.random.normal(kg(), (k, k, cin, cout), jnp.float32) * std
        eps = 1e-5
        gamma = jnp.ones((cout,), jnp.float32)
        beta = jnp.zeros((cout,), jnp.float32)
        rmean = jnp.zeros((cout,), jnp.float32)
        rvar = jnp.ones((cout,), jnp.float32)
        scale = gamma / jnp.sqrt(rvar + eps)
        bias = beta - rmean * scale
        K = k * k * cin
        self.wp, self.sp, self.bp = _pad_params(w.reshape(K, cout), scale, bias,
                                                K, cout)

    def __call__(self, x):
        return conv2d_fused(x, self.wp, self.sp, self.bp, k=self.k,
                            cout=self.cout, stride=self.s, silu=True,
                            out_dtype=jnp.bfloat16)


class ELAN:
    def __init__(self, kg, cin, cout, n):
        c = cout // 4
        self.cbs0 = CBS(kg, cin, c, 1, 1)
        self.cbs1 = CBS(kg, cin, c, 1, 1)
        self.seq2 = [CBS(kg, c, c, 3, 1) for _ in range(n)]
        self.seq3 = [CBS(kg, c, c, 3, 1) for _ in range(n)]
        self.cbs5 = CBS(kg, cout, cout, 1, 1)

    def __call__(self, x):
        x0 = self.cbs0(x)
        x1 = self.cbs1(x)
        x2 = x1
        for m in self.seq2:
            x2 = m(x2)
        x3 = x2
        for m in self.seq3:
            x3 = m(x3)
        return self.cbs5(jnp.concatenate([x0, x1, x2, x3], axis=-1))


class MP:
    def __init__(self, kg, cin, cout):
        c = cout // 2
        self.cbs1 = CBS(kg, cin, c, 1, 1)
        self.cbs2 = CBS(kg, cin, c, 1, 1)
        self.cbs3 = CBS(kg, c, c, 3, 2)

    def __call__(self, x):
        x0 = self.cbs1(maxpool_2x2(x))
        x1 = self.cbs3(self.cbs2(x))
        return jnp.concatenate([x0, x1], axis=-1)


class SPPCSPC:
    def __init__(self, kg, cin, cout):
        self.cbs0 = CBS(kg, cin, cout, 1, 1)
        self.cbs1 = CBS(kg, cout, cout, 3, 1)
        self.cbs2 = CBS(kg, cout, cout, 1, 1)
        self.cbs7 = CBS(kg, 4 * cout, cout, 1, 1)
        self.cbs8 = CBS(kg, cout, cout, 3, 1)
        self.cbs9 = CBS(kg, cin, cout, 1, 1)
        self.cbs11 = CBS(kg, 2 * cout, cout, 1, 1)

    def __call__(self, x):
        x0 = self.cbs2(self.cbs1(self.cbs0(x)))
        x1 = maxpool_same(x0, 5)
        x2 = maxpool_same(x0, 9)
        x3 = maxpool_same(x0, 13)
        x0 = self.cbs8(self.cbs7(jnp.concatenate([x0, x1, x2, x3], axis=-1)))
        x4 = self.cbs9(x)
        return self.cbs11(jnp.concatenate([x0, x4], axis=-1))


class ELAN_H:
    def __init__(self, kg, cin, cout):
        c = cout // 2
        self.cbs0 = CBS(kg, cin, cout, 1, 1)
        self.cbs1 = CBS(kg, cin, cout, 1, 1)
        self.cbs2 = CBS(kg, cout, c, 3, 1)
        self.cbs3 = CBS(kg, c, c, 3, 1)
        self.cbs4 = CBS(kg, c, c, 3, 1)
        self.cbs5 = CBS(kg, c, c, 3, 1)
        self.cbs7 = CBS(kg, 2 * cout + 4 * c, cout, 1, 1)

    def __call__(self, x):
        x0 = self.cbs0(x)
        x1 = self.cbs1(x)
        x2 = self.cbs2(x1)
        x3 = self.cbs3(x2)
        x4 = self.cbs4(x3)
        x5 = self.cbs5(x4)
        return self.cbs7(jnp.concatenate([x0, x1, x2, x3, x4, x5], axis=-1))


class Head:  # 1x1 conv (with bias, no BN, no activation) -> (N,3,S,S,5+nc)
    def __init__(self, kg, cin, output_size, output_class):
        cout = 3 * (5 + output_class)
        self.cout = cout
        self.output_size = output_size
        self.output_class = output_class
        std = 0.5 / math.sqrt(cin)
        w = jax.random.normal(kg(), (1, 1, cin, cout), jnp.float32) * std
        b = jax.random.normal(kg(), (cout,), jnp.float32) * 0.01
        scale = jnp.ones((cout,), jnp.float32)
        self.wp, self.sp, self.bp = _pad_params(w.reshape(cin, cout), scale, b,
                                                cin, cout)

    def __call__(self, x):
        y = conv2d_fused(x, self.wp, self.sp, self.bp, k=1, cout=self.cout,
                         stride=1, silu=False, out_dtype=jnp.float32)
        N, S, _, _ = y.shape
        e = 5 + self.output_class
        return y.reshape(N, S, S, 3, e).transpose(0, 3, 1, 2, 4)


_ANCHORS = (((12, 16), (19, 36), (40, 28)),
            ((36, 75), (76, 55), (72, 146)),
            ((142, 110), (192, 243), (459, 401)))
_STRIDES = (8, 16, 32)


def decode(heads):
    outs = []
    for h, stride, anc in zip(heads, _STRIDES, _ANCHORS):
        N, A, S, _, E = h.shape
        y = jax.nn.sigmoid(h)
        gy, gx = jnp.meshgrid(jnp.arange(S, dtype=jnp.float32),
                              jnp.arange(S, dtype=jnp.float32), indexing="ij")
        grid = jnp.stack([gx, gy], axis=-1)                       # (S,S,2)
        anc = jnp.asarray(anc, jnp.float32).reshape(1, A, 1, 1, 2)
        xy = (y[..., 0:2] * 2.0 - 0.5 + grid[None, None]) * stride
        wh = (y[..., 2:4] * 2.0) ** 2 * anc
        outs.append(jnp.concatenate([xy, wh, y[..., 4:]], axis=-1).reshape(N, -1, E))
    return jnp.concatenate(outs, axis=1)


# ----------------------------------------------------------------------------
# yolov7 model
# ----------------------------------------------------------------------------
class YOLOv7:
    def __init__(self, kg, args):
        dim_dict = {"s": 16, "m": 32, "l": 64}
        n_dict = {"s": 1, "m": 2, "l": 3}
        dim = dim_dict[args.model_type]
        n = n_dict[args.model_type]
        self.output_size = args.output_size
        self.output_class = args.output_class
        self.cbs0 = CBS(kg, 3, dim, 3, 1)
        self.cbs1 = CBS(kg, dim, 2 * dim, 3, 2)
        self.cbs2 = CBS(kg, 2 * dim, 2 * dim, 3, 1)
        self.cbs3 = CBS(kg, 2 * dim, 4 * dim, 3, 2)
        self.elan4 = ELAN(kg, 4 * dim, 8 * dim, n)
        self.mp5 = MP(kg, 8 * dim, 8 * dim)
        self.elan6 = ELAN(kg, 8 * dim, 16 * dim, n)
        self.mp7 = MP(kg, 16 * dim, 16 * dim)
        self.elan8 = ELAN(kg, 16 * dim, 32 * dim, n)
        self.mp9 = MP(kg, 32 * dim, 32 * dim)
        self.elan10 = ELAN(kg, 32 * dim, 32 * dim, n)
        self.sppcspc11 = SPPCSPC(kg, 32 * dim, 16 * dim)
        self.cbs12 = CBS(kg, 16 * dim, 8 * dim, 1, 1)
        self.l8_concat = CBS(kg, 32 * dim, 8 * dim, 1, 1)
        self.elan_h15 = ELAN_H(kg, 16 * dim, 8 * dim)
        self.cbs16 = CBS(kg, 8 * dim, 4 * dim, 1, 1)
        self.l6_concat = CBS(kg, 16 * dim, 4 * dim, 1, 1)
        self.elan_h19 = ELAN_H(kg, 8 * dim, 4 * dim)
        self.mp20 = MP(kg, 4 * dim, 8 * dim)
        self.elan_h22 = ELAN_H(kg, 16 * dim, 8 * dim)
        self.mp23 = MP(kg, 8 * dim, 16 * dim)
        self.elan_h25 = ELAN_H(kg, 32 * dim, 16 * dim)
        self.head0 = Head(kg, 4 * dim, self.output_size[0], self.output_class)
        self.head1 = Head(kg, 8 * dim, self.output_size[1], self.output_class)
        self.head2 = Head(kg, 16 * dim, self.output_size[2], self.output_class)

    def __call__(self, x_nchw):
        x = jnp.transpose(x_nchw, (0, 2, 3, 1))   # NCHW -> NHWC
        x = self.cbs0(x)
        x = self.cbs1(x)
        x = self.cbs2(x)
        x = self.cbs3(x)
        x = self.elan4(x)
        x = self.mp5(x)
        l6 = self.elan6(x)
        x = self.mp7(l6)
        l8 = self.elan8(x)
        x = self.mp9(l8)
        x = self.elan10(x)
        l11 = self.sppcspc11(x)
        x = self.cbs12(l11)
        x = upsample_2x(x)
        l8c = self.l8_concat(l8)
        x = jnp.concatenate([x, l8c], axis=-1)
        l15 = self.elan_h15(x)
        x = self.cbs16(l15)
        x = upsample_2x(x)
        l6c = self.l6_concat(l6)
        x = jnp.concatenate([x, l6c], axis=-1)
        x = self.elan_h19(x)
        head0 = self.head0(x)
        x = self.mp20(x)
        x = jnp.concatenate([x, l15], axis=-1)
        x = self.elan_h22(x)
        head1 = self.head1(x)
        x = self.mp23(x)
        x = jnp.concatenate([x, l11], axis=-1)
        x = self.elan_h25(x)
        head2 = self.head2(x)
        return decode([head0, head1, head2])


if __name__ == "__main__":
    class Args:
        pass

    H = 64  # input must be divisible by 32
    args = Args()
    args.model_type = "s"          # dim=16, n=1
    args.output_class = 10
    args.output_size = (H // 8, H // 16, H // 32)

    kg = _KeyGen(0)
    model = YOLOv7(kg, args)

    x = jax.random.normal(jax.random.PRNGKey(0), (2, 3, H, H), jnp.float32)
    out = model(x)
    jax.block_until_ready(out)
    assert out.shape == (2, 3 * (8 * 8 + 4 * 4 + 2 * 2), 5 + args.output_class)
    assert bool(jnp.all(jnp.isfinite(out)))
    print("KERNEL_OK")
</pallas_src>

<mosaic_0001>
module attributes {stable_mosaic.version = 11 : i64} {
  func.func @_fused_matmul_kernel(%arg0: i32, %arg1: i32, %arg2: i32, %arg3: memref<256x128xbf16, #tpu.memory_space<vmem>>, %arg4: memref<128x128xbf16, #tpu.memory_space<vmem>>, %arg5: memref<1x128xf32, #tpu.memory_space<vmem>>, %arg6: memref<1x128xf32, #tpu.memory_space<vmem>>, %arg7: memref<256x128xbf16, #tpu.memory_space<vmem>>, %arg8: memref<256x128xf32, #tpu.memory_space<vmem>>) attributes {dimension_semantics = [#tpu.dimension_semantics<parallel>, #tpu.dimension_semantics<parallel>, #tpu.dimension_semantics<arbitrary>], iteration_bounds = array<i64: 32, 1, 1>, scalar_prefetch = 0 : i64, scratch_operands = 1 : i64, tpu.core_type = #tpu.core_type<tc>, window_params = [{transform_indices = @transform_0, window_bounds = array<i64: 256, 128>}, {transform_indices = @transform_1, window_bounds = array<i64: 128, 128>}, {transform_indices = @transform_2, window_bounds = array<i64: 1, 128>}, {transform_indices = @transform_3, window_bounds = array<i64: 1, 128>}, {transform_indices = @transform_4, window_bounds = array<i64: 256, 128>}]} {
    %c0_i32 = arith.constant 0 : i32
    %0 = arith.cmpi eq, %arg2, %c0_i32 : i32
    %1 = arith.extui %0 : i1 to i32
    %c0_i32_0 = arith.constant 0 : i32
    %2 = arith.cmpi ne, %1, %c0_i32_0 : i32
    scf.if %2 {
      %cst_10 = arith.constant 0.000000e+00 : f32
      %12 = vector.broadcast %cst_10 : f32 to vector<256x128xf32>
      %c0_11 = arith.constant 0 : index
      %c0_12 = arith.constant 0 : index
      %13 = vector.load %arg8[%c0_11, %c0_12] : memref<256x128xf32, #tpu.memory_space<vmem>>, vector<256x128xf32>
      tpu.vector_store %arg8[%c0_11, %c0_12], %12 {strides = array<i32>} : memref<256x128xf32, #tpu.memory_space<vmem>>, vector<256x128xf32>,
    } else {
    }
    %c0 = arith.constant 0 : index
    %c0_1 = arith.constant 0 : index
    %3 = vector.load %arg8[%c0, %c0_1] : memref<256x128xf32, #tpu.memory_space<vmem>>, vector<256x128xf32>
    %c0_2 = arith.constant 0 : index
    %c0_3 = arith.constant 0 : index
    %4 = vector.load %arg3[%c0_2, %c0_3] : memref<256x128xbf16, #tpu.memory_space<vmem>>, vector<256x128xbf16>
    %c0_4 = arith.constant 0 : index
    %c0_5 = arith.constant 0 : index
    %5 = vector.load %arg4[%c0_4, %c0_5] : memref<128x128xbf16, #tpu.memory_space<vmem>>, vector<128x128xbf16>
    %cst = arith.constant dense<0.000000e+00> : vector<256x128xf32>
    %6 = tpu.matmul %4, %5, %cst {dimension_numbers = #tpu.dot_dimension_numbers<[1], [0], [0], [1], [0, 0, 1, 1], [], []>} : vector<256x128xbf16>, vector<128x128xbf16>, vector<256x128xf32> -> vector<256x128xf32>
    %7 = arith.addf %3, %6 : vector<256x128xf32>
    %c0_6 = arith.constant 0 : index
    %c0_7 = arith.constant 0 : index
    %8 = vector.load %arg8[%c0_6, %c0_7] : memref<256x128xf32, #tpu.memory_space<vmem>>, vector<256x128xf32>
    tpu.vector_store %arg8[%c0_6, %c0_7], %7 {strides = array<i32>} : memref<256x128xf32, #tpu.memory_space<vmem>>, vector<256x128xf32>,
    %c0_i32_8 = arith.constant 0 : i32
    %9 = arith.cmpi eq, %arg2, %c0_i32_8 : i32
    %10 = arith.extui %9 : i1 to i32
    %c0_i32_9 = arith.constant 0 : i32
    %11 = arith.cmpi ne, %10, %c0_i32_9 : i32
    scf.if %11 {
      %c0_10 = arith.constant 0 : index
      %c0_11 = arith.constant 0 : index
      %12 = vector.load %arg8[%c0_10, %c0_11] : memref<256x128xf32, #tpu.memory_space<vmem>>, vector<256x128xf32>
      %c0_12 = arith.constant 0 : index
      %c0_13 = arith.constant 0 : index
      %13 = vector.load %arg5[%c0_12, %c0_13] : memref<1x128xf32, #tpu.memory_space<vmem>>, vector<1x128xf32>
      %14 = vector.broadcast %13 : vector<1x128xf32> to vector<256x128xf32>
      %15 = arith.mulf %12, %14 : vector<256x128xf32>
      %c0_14 = arith.constant 0 : index
      %c0_15 = arith.constant 0 : index
      %16 = vector.load %arg6[%c0_14, %c0_15] : memref<1x128xf32, #tpu.memory_space<vmem>>, vector<1x128xf32>
      %17 = vector.broadcast %16 : vector<1x128xf32> to vector<256x128xf32>
      %18 = arith.addf %15, %17 : vector<256x128xf32>
      %19 = arith.negf %18 : vector<256x128xf32>
      %20 = math.exp %19 : vector<256x128xf32>
      %cst_16 = arith.constant 1.000000e+00 : f32
      %21 = vector.broadcast %cst_16 : f32 to vector<256x128xf32>
      %22 = arith.addf %21, %20 : vector<256x128xf32>
      %23 = arith.divf %21, %22 : vector<256x128xf32>
      %24 = arith.mulf %18, %23 : vector<256x128xf32>
      %25 = arith.truncf %24 : vector<256x128xf32> to vector<256x128xbf16>
      %c0_17 = arith.constant 0 : index
      %c0_18 = arith.constant 0 : index
      %26 = vector.load %arg7[%c0_17, %c0_18] : memref<256x128xbf16, #tpu.memory_space<vmem>>, vector<256x128xbf16>
      tpu.vector_store %arg7[%c0_17, %c0_18], %25 {strides = array<i32>} : memref<256x128xbf16, #tpu.memory_space<vmem>>, vector<256x128xbf16>,
    } else {
    }
    return
  }
  func.func @transform_0(%arg0: i32, %arg1: i32, %arg2: i32) -> (i32, i32) {
    %c0_i32 = arith.constant 0 : i32
    return %arg0, %arg2 : i32, i32
  }
  func.func @transform_1(%arg0: i32, %arg1: i32, %arg2: i32) -> (i32, i32) {
    %c0_i32 = arith.constant 0 : i32
    return %arg2, %arg1 : i32, i32
  }
  func.func @transform_2(%arg0: i32, %arg1: i32, %arg2: i32) -> (i32, i32) {
    %c0_i32 = arith.constant 0 : i32
    %c0_i32_0 = arith.constant 0 : i32
    return %c0_i32, %arg1 : i32, i32
  }
  func.func @transform_3(%arg0: i32, %arg1: i32, %arg2: i32) -> (i32, i32) {
    %c0_i32 = arith.constant 0 : i32
    %c0_i32_0 = arith.constant 0 : i32
    return %c0_i32, %arg1 : i32, i32
  }
  func.func @transform_4(%arg0: i32, %arg1: i32, %arg2: i32) -> (i32, i32) {
    %c0_i32 = arith.constant 0 : i32
    return %arg0, %arg1 : i32, i32
  }
}

</mosaic_0001>

<bundles_post_ra>
// kernel: conv2d_fused.1
= control target key start
LH: loop header
LB: loop body
LE: loop exit
PB: predicated region body
PF: predicated region fallthrough
CT: control target
= control target key end

     0   :  { %s1950_s15 = smov 0   ;;  %s1952_s16 = smov 0   ;;  %s2252_s0 = inlined_call_operand.vmem [shape: bf16[8192,128], index: 0, kind: input, shape index: {}]   ;;  %s2253_s1 = inlined_call_operand.vmem [shape: bf16[128,128], index: 1, kind: input, shape index: {}]   ;;  %s2254_s2 = inlined_call_operand.vmem [shape: f32[1,128], index: 2, kind: input, shape index: {}]   ;;  %s2255_s3 = inlined_call_operand.vmem [shape: f32[1,128], index: 3, kind: input, shape index: {}]   ;;  %s2256_s4 = inlined_call_operand.vmem [shape: bf16[8192,128], index: 4, kind: output, shape index: {}]  }
   0x1   :  { %s1954_s17 = smov 0  }
   0x2 LB: > { %s33_s18 = sadd.s32 1, %s1919_s16  ;;  %p1413_p0 = scmp.ge.s32.totalorder %s1923_s17, 1  ;;  %s1923_s17 = sphi %s1954_s17, %s14_s17   ;;  %s1919_s16 = sphi %s1952_s16, %s2258_s16   ;;  %s1915_s15 = sphi %s1950_s15, %s2257_s15  }
   0x3   : > { %p35_p1 = scmp.ge.s32.totalorder %s33_s18, 32  ;;  %p221_p2 = scmp.lt.s32.totalorder %s1923_s17, 33 }
   0x5   : > { %s2260_s18 = smov (%p35_p1, %s33_s18), 0  ;;  %p222_p3 = pnand %p1413_p0, %p221_p2 }
   0x6   : > { %s1414_s21 = sshll.u32 (!%p222_p3), %s1915_s15, 5 }
   0x7   : > { %225 = sbr.rel (%p222_p3) target bundleno = 331 (0x14b), region = 36  ;;  %p268_p4 = scmp.lt.s32.totalorder (!%p222_p3), %s1414_s21, 1023 }
   0xc   : > { %v1749_v0 = vld [vmem:[%s2253_s1 + $0x38] sm:$0xff]   ;;  %v1750_v1 = vld [vmem:[%s2253_s1 + $0x30] sm:$0xff]   ;;  %s2262_s21 = smov (!%p268_p4, %s1414_s21), 1023  ;;  %v1751_v2 = vld [vmem:[%s2253_s1 + $0x28] sm:$0xff]  }
   0xd   : > { %1661 = vmatprep.subr.bf16.mxu0 %v1749_v0  ;;  %1709 = vmatprep.subr.bf16.mxu1 %v1749_v0  ;;  %s1415_s26 = sshll.u32 %s2262_s21, 2  ;;  %v1752_v3 = vld [vmem:[%s2253_s1 + $0x20] sm:$0xff]   ;;  %v1753_v6 = vld [vmem:[%s2253_s1 + $0x18] sm:$0xff]   ;;  %v1754_v7 = vld [vmem:[%s2253_s1 + $0x10] sm:$0xff]  }
   0xe   : > { %1662 = vmatpush3.bf16.msra.mxu0 %v1749_v0  ;;  %1717 = vmatpush3.bf16.msra.mxu1 %v1749_v0  ;;  %s1985_s29 = scalar_lea.vmem %s2252_s0, %s1415_s26  ;;  %v1755_v8 = vld [vmem:[%s2253_s1 + $0x8] sm:$0xff]   ;;  %v1756_v9 = vld [vmem:[%s2253_s1] sm:$0xff]   ;;  %s2180_s24 = scalar_lea.vmem %s2256_s4, %s1415_s26 }
   0xf   : > { %1663 = vmatprep.subr.bf16.mxu0 %v1750_v1  ;;  %1710 = vmatprep.subr.bf16.mxu1 %v1750_v1  ;;  %v1757_v4 = vld [vmem:[%s1985_s29] sm:$0xff]   ;;  %v1759_v10 = vld [vmem:[%s1985_s29 + $0x8] sm:$0xff]   ;;  %v1761_v12 = vld [vmem:[%s1985_s29 + $0x10] sm:$0xff]  }
  0x10   : > { %v1758_v5 = vld [vmem:[%s1985_s29 + $0x40] sm:$0xff]   ;;  %1677 = vmatprep.mubr.bf16.mxu0 %v1757_v4  ;;  %v1760_v11 = vld [vmem:[%s1985_s29 + $0x48] sm:$0xff]   ;;  %v1762_v13 = vld [vmem:[%s1985_s29 + $0x50] sm:$0xff]  }
  0x11   : > { %1693 = vmatprep.mubr.bf16.mxu1 %v1758_v5  ;;  %v1763_v14 = vld [vmem:[%s1985_s29 + $0x18] sm:$0xff]   ;;  %v1765_v16 = vld [vmem:[%s1985_s29 + $0x20] sm:$0xff]   ;;  %v1767_v18 = vld [vmem:[%s1985_s29 + $0x28] sm:$0xff]  }
  0x12   : > { %1664 = vmatpush3.bf16.msra.mxu0 %v1750_v1  ;;  %1718 = vmatpush3.bf16.msra.mxu1 %v1750_v1  ;;  %v1764_v15 = vld [vmem:[%s1985_s29 + $0x58] sm:$0xff]   ;;  %v1766_v17 = vld [vmem:[%s1985_s29 + $0x60] sm:$0xff]   ;;  %v1768_v19 = vld [vmem:[%s1985_s29 + $0x68] sm:$0xff]  }
  0x13   : > { %1665 = vmatprep.subr.bf16.mxu0 %v1751_v2  ;;  %1711 = vmatprep.subr.bf16.mxu1 %v1751_v2  ;;  %v1769_v20 = vld [vmem:[%s1985_s29 + $0x30] sm:$0xff]   ;;  %v1771_v22 = vld [vmem:[%s1985_s29 + $0x38] sm:$0xff]   ;;  %v2021_v24 = vld [vmem:[%s2254_s2] ss:$0 sm:$0xff] }
  0x14   : > { %v1770_v21 = vld [vmem:[%s1985_s29 + $0x70] sm:$0xff]   ;;  %v1772_v23 = vld [vmem:[%s1985_s29 + $0x78] sm:$0xff]   ;;  %v2026_v26 = vld [vmem:[%s2255_s3] ss:$0 sm:$0xff] }
  0x16   : > { %1666 = vmatpush3.bf16.msra.mxu0 %v1751_v2  ;;  %1719 = vmatpush3.bf16.msra.mxu1 %v1751_v2 }
  0x17   : > { %1667 = vmatprep.subr.bf16.mxu0 %v1752_v3  ;;  %1712 = vmatprep.subr.bf16.mxu1 %v1752_v3 }
  0x1a   : > { %1668 = vmatpush3.bf16.msra.mxu0 %v1752_v3  ;;  %1720 = vmatpush3.bf16.msra.mxu1 %v1752_v3 }
  0x1b   : > { %1669 = vmatprep.subr.bf16.mxu0 %v1753_v6  ;;  %1713 = vmatprep.subr.bf16.mxu1 %v1753_v6 }
  0x1e   : > { %1670 = vmatpush3.bf16.msra.mxu0 %v1753_v6  ;;  %1721 = vmatpush3.bf16.msra.mxu1 %v1753_v6 }
  0x1f   : > { %1671 = vmatprep.subr.bf16.mxu0 %v1754_v7  ;;  %1714 = vmatprep.subr.bf16.mxu1 %v1754_v7 }
  0x22   : > { %1672 = vmatpush3.bf16.msra.mxu0 %v1754_v7  ;;  %1722 = vmatpush3.bf16.msra.mxu1 %v1754_v7 }
  0x23   : > { %1673 = vmatprep.subr.bf16.mxu0 %v1755_v8  ;;  %1715 = vmatprep.subr.bf16.mxu1 %v1755_v8 }
  0x26   : > { %1674 = vmatpush3.bf16.msra.mxu0 %v1755_v8  ;;  %1723 = vmatpush3.bf16.msra.mxu1 %v1755_v8 }
  0x27   : > { %1675 = vmatprep.subr.bf16.mxu0 %v1756_v9  ;;  %1716 = vmatprep.subr.bf16.mxu1 %v1756_v9 }
  0x2a   : > { %1676 = vmatpush3.bf16.msra.mxu0 %v1756_v9  ;;  %1724 = vmatpush3.bf16.msra.mxu1 %v1756_v9 }
  0x2d   : > { %1678 = vmatmul.mubr.bf16.vlgmr.msra.gmra.mxu0 %v1759_v10  ;;  %1694 = vmatmul.mubr.bf16.vlgmr.msra.gmra.mxu1 %v1760_v11 }
  0x2e   : > { %1681 = vmatprep.mubr.bf16.mxu0 %v1761_v12  ;;  %1697 = vmatprep.mubr.bf16.mxu1 %v1762_v13 }
  0x35   : > { %1682 = vmatmul.mubr.bf16.gmra.mxu0 %v1763_v14  ;;  %1698 = vmatmul.mubr.bf16.gmra.mxu1 %v1764_v15 }
  0x36   : > { %1685 = vmatprep.mubr.bf16.mxu0 %v1765_v16  ;;  %1701 = vmatprep.mubr.bf16.mxu1 %v1766_v17 }
  0x3d   : > { %1686 = vmatmul.mubr.bf16.gmra.mxu0 %v1767_v18  ;;  %1702 = vmatmul.mubr.bf16.gmra.mxu1 %v1768_v19 }
  0x3e   : > { %1689 = vmatprep.mubr.bf16.mxu0 %v1769_v20  ;;  %1705 = vmatprep.mubr.bf16.mxu1 %v1770_v21 }
  0x45   : > { %1690 = vmatmul.mubr.bf16.gmra.mxu0 %v1771_v22  ;;  %1706 = vmatmul.mubr.bf16.gmra.mxu1 %v1772_v23 }
  0xed   : > { %v1679_v25 = vpop.f32.mrf.mxu0  ;;  %v1695_v27 = vpop.f32.mrf.mxu1 }
  0xee   : > { %v830_v28 = vmul.f32 %v1679_v25, %v2021_v24  ;;  %v846_v29 = vmul.f32 %v1695_v27, %v2021_v24 }
  0xef   : > { %v595_v30 = vpop.f32.mrf.mxu0  ;;  %v659_v31 = vpop.f32.mrf.mxu1 }
  0xf0   : > { %v2031_v32 = vadd.f32 %v2026_v26, %v830_v28  ;;  %v2034_v33 = vadd.f32 %v2026_v26, %v846_v29  ;;  %v828_v34 = vmul.f32 %v2021_v24, %v595_v30  ;;  %v844_v35 = vmul.f32 %v2021_v24, %v659_v31 }
  0xf1   : > { %v1680_v36 = vpop.f32.mrf.mxu0  ;;  %v1696_v37 = vpop.f32.mrf.mxu1 }
  0xf2   : > { %v1446_v38 = vmul.f32 -1.442695, %v2031_v32  ;;  %v1462_v39 = vmul.f32 -1.442695, %v2034_v33  ;;  %v2041_v40 = vadd.f32 %v2026_v26, %v828_v34  ;;  %v2044_v41 = vadd.f32 %v2026_v26, %v844_v35 }
  0xf3   : > { %v831_v42 = vmul.f32 %v1680_v36, %v2021_v24  ;;  %v847_v43 = vmul.f32 %v1696_v37, %v2021_v24  ;;  %v598_v44 = vpop.f32.mrf.mxu0  ;;  %v662_v45 = vpop.f32.mrf.mxu1 }
  0xf4   : > { %1773 = vpow2.f32 %v1446_v38  ;;  %v1444_v46 = vmul.f32 -1.442695, %v2041_v40  ;;  %v1460_v47 = vmul.f32 -1.442695, %v2044_v41  ;;  %v829_v48 = vmul.f32 %v2021_v24, %v598_v44 }
  0xf5   : > { %1775 = vpow2.f32 %v1462_v39  ;;  %v2052_v49 = vadd.f32 %v2026_v26, %v831_v42  ;;  %v2055_v50 = vadd.f32 %v2026_v26, %v847_v43  ;;  %v845_v51 = vmul.f32 %v2021_v24, %v662_v45  ;;  %v1683_v52 = vpop.f32.mrf.mxu0  ;;  %v1699_v53 = vpop.f32.mrf.mxu1 }
  0xf6   : > { %1777 = vpow2.f32 %v1444_v46  ;;  %v2059_v54 = vadd.f32 %v2026_v26, %v829_v48  ;;  %v834_v55 = vmul.f32 %v1683_v52, %v2021_v24  ;;  %v850_v56 = vmul.f32 %v1699_v53, %v2021_v24 }
  0xf7   : > { %1779 = vpow2.f32 %v1460_v47  ;;  %v1447_v57 = vmul.f32 -1.442695, %v2052_v49  ;;  %v1463_v58 = vmul.f32 -1.442695, %v2055_v50  ;;  %v2066_v59 = vadd.f32 %v2026_v26, %v845_v51  ;;  %v611_v60 = vpop.f32.mrf.mxu0  ;;  %v675_v61 = vpop.f32.mrf.mxu1 }
  0xf8   : > { %v1445_v62 = vmul.f32 -1.442695, %v2059_v54  ;;  %v2070_v63 = vadd.f32 %v2026_v26, %v834_v55  ;;  %v2073_v0 = vadd.f32 %v2026_v26, %v850_v56  ;;  %v832_v1 = vmul.f32 %v2021_v24, %v611_v60 }
  0xf9   : > { %1781 = vpow2.f32 %v1447_v57  ;;  %v1461_v2 = vmul.f32 -1.442695, %v2066_v59  ;;  %v848_v3 = vmul.f32 %v2021_v24, %v675_v61  ;;  %v1684_v4 = vpop.f32.mrf.mxu0  ;;  %v1700_v5 = vpop.f32.mrf.mxu1 }
  0xfa   : > { %1783 = vpow2.f32 %v1463_v58  ;;  %v1450_v6 = vmul.f32 -1.442695, %v2070_v63  ;;  %v1466_v7 = vmul.f32 -1.442695, %v2073_v0  ;;  %v2081_v8 = vadd.f32 %v2026_v26, %v832_v1 }
  0xfb   : > { %1785 = vpow2.f32 %v1445_v62  ;;  %v2084_v9 = vadd.f32 %v2026_v26, %v848_v3  ;;  %v835_v10 = vmul.f32 %v1684_v4, %v2021_v24  ;;  %v851_v11 = vmul.f32 %v1700_v5, %v2021_v24  ;;  %v614_v12 = vpop.f32.mrf.mxu0  ;;  %v678_v13 = vpop.f32.mrf.mxu1 }
  0xfc   : > { %1787 = vpow2.f32 %v1461_v2  ;;  %v1448_v14 = vmul.f32 -1.442695, %v2081_v8  ;;  %v833_v15 = vmul.f32 %v2021_v24, %v614_v12  ;;  %v849_v16 = vmul.f32 %v2021_v24, %v678_v13 }
  0xfd   : > { %1789 = vpow2.f32 %v1450_v6  ;;  %v1464_v17 = vmul.f32 -1.442695, %v2084_v9  ;;  %v2093_v18 = vadd.f32 %v2026_v26, %v835_v10  ;;  %v2096_v19 = vadd.f32 %v2026_v26, %v851_v11  ;;  %v1687_v20 = vpop.f32.mrf.mxu0  ;;  %v1703_v21 = vpop.f32.mrf.mxu1 }
  0xfe   : > { %1791 = vpow2.f32 %v1466_v7  ;;  %v2099_v22 = vadd.f32 %v2026_v26, %v833_v15  ;;  %v2105_v30 = vadd.f32 %v2026_v26, %v849_v16  ;;  %v838_v34 = vmul.f32 %v1687_v20, %v2021_v24 }
  0xff   : > { %1793 = vpow2.f32 %v1448_v14  ;;  %v1451_v23 = vmul.f32 -1.442695, %v2093_v18  ;;  %v1467_v25 = vmul.f32 -1.442695, %v2096_v19  ;;  %v627_v27 = vpop.f32.mrf.mxu0  ;;  %v691_v28 = vpop.f32.mrf.mxu1  ;;  %v854_v39 = vmul.f32 %v1703_v21, %v2021_v24 }
 0x100   : > { %1795 = vpow2.f32 %v1464_v17  ;;  %v1449_v29 = vmul.f32 -1.442695, %v2099_v22  ;;  %v1465_v47 = vmul.f32 -1.442695, %v2105_v30  ;;  %v2111_v51 = vadd.f32 %v2026_v26, %v838_v34 }
 0x101   : > { %v1774_v31 = vpop.eup %1773  ;;  %1797 = vpow2.f32 %v1451_v23  ;;  %v1688_v35 = vpop.f32.mrf.mxu0  ;;  %v2114_v55 = vadd.f32 %v2026_v26, %v854_v39  ;;  %v836_v62 = vmul.f32 %v2021_v24, %v627_v27  ;;  %v852_v4 = vmul.f32 %v2021_v24, %v691_v28 }
 0x102   : > { %v1704_v36 = vpop.f32.mrf.mxu1  ;;  %v1776_v37 = vpop.eup %1775  ;;  %v997_v38 = vadd.f32 1.0, %v1774_v31  ;;  %1799 = vpow2.f32 %v1467_v25  ;;  %v1454_v3 = vmul.f32 -1.442695, %v2111_v51  ;;  %v839_v11 = vmul.f32 %v1688_v35, %v2021_v24 }
 0x103   : > { %v1778_v42 = vpop.eup %1777  ;;  %v1013_v43 = vadd.f32 1.0, %v1776_v37  ;;  %1801 = vpow2.f32 %v1449_v29  ;;  %v630_v44 = vpop.f32.mrf.mxu0  ;;  %v1470_v10 = vmul.f32 -1.442695, %v2114_v55  ;;  %v855_v14 = vmul.f32 %v1704_v36, %v2021_v24 }
 0x104   : > { %v1780_v45 = vpop.eup %1779  ;;  %1803 = vrcp.f32 %v997_v38  ;;  %v995_v46 = vadd.f32 1.0, %v1778_v42  ;;  %v694_v52 = vpop.f32.mrf.mxu1  ;;  %v837_v15 = vmul.f32 %v2021_v24, %v630_v44  ;;  %v2126_v28 = vadd.f32 %v2026_v26, %v836_v62 }
 0x105   : > { %1805 = vrcp.f32 %v1013_v43  ;;  %v1011_v48 = vadd.f32 1.0, %v1780_v45  ;;  %v1691_v58 = vpop.f32.mrf.mxu0  ;;  %v853_v21 = vmul.f32 %v2021_v24, %v694_v52  ;;  %v2130_v36 = vadd.f32 %v2026_v26, %v852_v4 }
 0x106   : > { %v1782_v53 = vpop.eup %1781  ;;  %1807 = vrcp.f32 %v995_v46  ;;  %v1707_v5 = vpop.f32.mrf.mxu1  ;;  %v842_v23 = vmul.f32 %v1691_v58, %v2021_v24  ;;  %v2133_v37 = vadd.f32 %v2026_v26, %v839_v11  ;;  %v2136_v42 = vadd.f32 %v2026_v26, %v855_v14 }
 0x107   : > { %v1784_v56 = vpop.eup %1783  ;;  %1809 = vrcp.f32 %v1011_v48  ;;  %v998_v57 = vadd.f32 1.0, %v1782_v53  ;;  %v643_v16 = vpop.f32.mrf.mxu0  ;;  %v858_v29 = vmul.f32 %v1707_v5, %v2021_v24  ;;  %v2139_v43 = vadd.f32 %v2026_v26, %v837_v15 }
 0x108   : > { %v1786_v60 = vpop.eup %1785  ;;  %v1014_v61 = vadd.f32 1.0, %v1784_v56  ;;  %1811 = vpow2.f32 %v1465_v47  ;;  %v707_v31 = vpop.f32.mrf.mxu1  ;;  %v2142_v47 = vadd.f32 %v2026_v26, %v853_v21  ;;  %v2145_v48 = vadd.f32 %v2026_v26, %v842_v23 }
 0x109   : > { %v1788_v1 = vpop.eup %1787  ;;  %1813 = vrcp.f32 %v998_v57  ;;  %v996_v2 = vadd.f32 1.0, %v1786_v60  ;;  %v1692_v44 = vpop.f32.mrf.mxu0  ;;  %v2148_v56 = vadd.f32 %v2026_v26, %v858_v29  ;;  %v840_v57 = vmul.f32 %v2021_v24, %v643_v16 }
 0x10a   : > { %v1790_v6 = vpop.eup %1789  ;;  %1815 = vrcp.f32 %v1014_v61  ;;  %v1012_v7 = vadd.f32 1.0, %v1788_v1  ;;  %v1708_v58 = vpop.f32.mrf.mxu1  ;;  %v1452_v61 = vmul.f32 -1.442695, %v2126_v28  ;;  %v856_v62 = vmul.f32 %v2021_v24, %v707_v31 }
 0x10b   : > { %v1792_v12 = vpop.eup %1791  ;;  %1817 = vrcp.f32 %v996_v2  ;;  %v1001_v13 = vadd.f32 1.0, %v1790_v6  ;;  %v843_v1 = vmul.f32 %v1692_v44, %v2021_v24  ;;  %v1468_v4 = vmul.f32 -1.442695, %v2130_v36  ;;  %v646_v14 = vpop.f32.mrf.mxu0 }
 0x10c   : > { %v1794_v17 = vpop.eup %1793  ;;  %1819 = vrcp.f32 %v1012_v7  ;;  %v1017_v20 = vadd.f32 1.0, %v1792_v12  ;;  %v1455_v5 = vmul.f32 -1.442695, %v2133_v37  ;;  %v1471_v6 = vmul.f32 -1.442695, %v2136_v42 }
 0x10d   : > { %v1796_v25 = vpop.eup %1795  ;;  %1821 = vrcp.f32 %v1001_v13  ;;  %v999_v27 = vadd.f32 1.0, %v1794_v17  ;;  %v1453_v11 = vmul.f32 -1.442695, %v2139_v43  ;;  %v1469_v12 = vmul.f32 -1.442695, %v2142_v47 }
 0x10e   : > { %v1798_v34 = vpop.eup %1797  ;;  %1823 = vrcp.f32 %v1017_v20  ;;  %v1015_v35 = vadd.f32 1.0, %v1796_v25  ;;  %v859_v13 = vmul.f32 %v1708_v58, %v2021_v24  ;;  %v1458_v16 = vmul.f32 -1.442695, %v2145_v48 }
 0x10f   : > { %v1800_v38 = vpop.eup %1799  ;;  %1825 = vrcp.f32 %v999_v27  ;;  %v1002_v39 = vadd.f32 1.0, %v1798_v34  ;;  %v1474_v17 = vmul.f32 -1.442695, %v2148_v56  ;;  %v2163_v20 = vadd.f32 %v2026_v26, %v840_v57 }
 0x110   : > { %v1802_v45 = vpop.eup %1801  ;;  %1827 = vrcp.f32 %v1015_v35  ;;  %v1018_v46 = vadd.f32 1.0, %v1800_v38  ;;  %v2169_v25 = vadd.f32 %v2026_v26, %v843_v1  ;;  %v841_v31 = vmul.f32 %v2021_v24, %v646_v14 }
 0x111   : > { %v1804_v52 = vpop.eup %1803  ;;  %1829 = vrcp.f32 %v1002_v39  ;;  %v1000_v53 = vadd.f32 1.0, %v1802_v45  ;;  %v710_v45 = vpop.f32.mrf.mxu1 }
 0x112   : > { %v1806_v60 = vpop.eup %1805  ;;  %1831 = vrcp.f32 %v1018_v46  ;;  %v1459_v1 = vmul.f32 -1.442695, %v2169_v25 }
 0x113   : > { %v1808_v2 = vpop.eup %1807  ;;  %1833 = vrcp.f32 %v1000_v53  ;;  %v1109_v35 = vmul.f32 %v1806_v60, %v2034_v33  ;;  %v2193_v60 = vadd.f32 %v2026_v26, %v841_v31 }
 0x114   : > { %v1810_v7 = vpop.eup %1809  ;;  %1835 = vpow2.f32 %v1454_v3  ;;  %v2166_v3 = vadd.f32 %v2026_v26, %v856_v62  ;;  %v1091_v39 = vmul.f32 %v1808_v2, %v2041_v40  ;;  %v1456_v40 = vmul.f32 -1.442695, %v2163_v20 }
 0x115   : > { %v1812_v15 = vpop.eup %1811  ;;  %1837 = vpow2.f32 %v1470_v10  ;;  %v1093_v10 = vmul.f32 %v1804_v52, %v2031_v32  ;;  %v2184_v32 = vadd.f32 %v2026_v26, %v859_v13  ;;  %v1107_v52 = vmul.f32 %v1810_v7, %v2044_v41 }
 0x116   : > { %v1814_v21 = vpop.eup %1813  ;;  %v1016_v23 = vadd.f32 1.0, %v1812_v15  ;;  %1839 = vpow2.f32 %v1452_v61  ;;  %v1472_v41 = vmul.f32 -1.442695, %v2166_v3  ;;  %v857_v62 = vmul.f32 %v2021_v24, %v710_v45 }
 0x117   : > { %v1816_v27 = vpop.eup %1815  ;;  %v1094_v29 = vmul.f32 %v1814_v21, %v2052_v49  ;;  %1841 = vpow2.f32 %v1468_v4  ;;  %v1475_v4 = vmul.f32 -1.442695, %v2184_v32 }
 0x118   : > { %v1818_v34 = vpop.eup %1817  ;;  %v1110_v38 = vmul.f32 %v1816_v27, %v2055_v50  ;;  %1843 = vrcp.f32 %v1016_v23  ;;  %v2208_v14 = vadd.f32 %v2026_v26, %v857_v62 }
 0x119   : > { %v1820_v49 = vpop.eup %1819  ;;  %v1550_v44 = vpack.c.bf16 %v1094_v29, %v1093_v10  ;;  %v1092_v33 = vmul.f32 %v1818_v34, %v2059_v54  ;;  %1845 = vpow2.f32 %v1455_v5 }
 0x11a   : > { %v1822_v46 = vpop.eup %1821  ;;  %v1590_v53 = vpack.c.bf16 %v1110_v38, %v1109_v35  ;;  %v1108_v50 = vmul.f32 %v1820_v49, %v2066_v59  ;;  %1847 = vpow2.f32 %v1471_v6 }
 0x11b   : > { %v1824_v57 = vpop.eup %1823  ;;  %1622 = vst [vmem:[%s2180_s24 + $0x8] sm:$0xff] %v1550_v44   ;;  %v1545_v58 = vpack.c.bf16 %v1092_v33, %v1091_v39  ;;  %1849 = vpow2.f32 %v1453_v11  ;;  %v1097_v6 = vmul.f32 %v1822_v46, %v2070_v63  ;;  %v1457_v11 = vmul.f32 -1.442695, %v2193_v60 }
 0x11c   : > { %v1826_v54 = vpop.eup %1825  ;;  %1630 = vst [vmem:[%s2180_s24 + $0x48] sm:$0xff] %v1590_v53   ;;  %v1585_v61 = vpack.c.bf16 %v1108_v50, %v1107_v52  ;;  %1851 = vpow2.f32 %v1469_v12  ;;  %v1113_v12 = vmul.f32 %v1824_v57, %v2073_v0 }
 0x11d   : > { %v1828_v59 = vpop.eup %1827  ;;  %1546 = vst [vmem:[%s2180_s24] sm:$0xff] %v1545_v58   ;;  %1853 = vpow2.f32 %v1458_v16  ;;  %v1095_v16 = vmul.f32 %v1826_v54, %v2081_v8  ;;  %v1473_v8 = vmul.f32 -1.442695, %v2208_v14 }
 0x11e   : > { %v1830_v2 = vpop.eup %1829  ;;  %1629 = vst [vmem:[%s2180_s24 + $0x40] sm:$0xff] %v1585_v61   ;;  %1855 = vpow2.f32 %v1474_v17  ;;  %v1111_v34 = vmul.f32 %v1828_v59, %v2084_v9 }
 0x11f   : > { %v1832_v5 = vpop.eup %1831  ;;  %v1098_v7 = vmul.f32 %v1830_v2, %v2093_v18  ;;  %1857 = vpow2.f32 %v1456_v40 }
 0x120   : > { %v1834_v24 = vpop.eup %1833  ;;  %v1114_v13 = vmul.f32 %v1832_v5, %v2096_v19  ;;  %1859 = vpow2.f32 %v1472_v41 }
 0x121   : > { %v1836_v15 = vpop.eup %1835  ;;  %v1560_v63 = vpack.c.bf16 %v1098_v7, %v1097_v6  ;;  %v1096_v18 = vmul.f32 %v1834_v24, %v2099_v22  ;;  %1861 = vpow2.f32 %v1459_v1 }
 0x122   : > { %v1838_v17 = vpop.eup %1837  ;;  %v1600_v21 = vpack.c.bf16 %v1114_v13, %v1113_v12  ;;  %v1005_v23 = vadd.f32 1.0, %v1836_v15  ;;  %1863 = vpow2.f32 %v1475_v4 }
 0x123   : > { %v1840_v0 = vpop.eup %1839  ;;  %1624 = vst [vmem:[%s2180_s24 + $0x18] sm:$0xff] %v1560_v63   ;;  %v1555_v19 = vpack.c.bf16 %v1096_v18, %v1095_v16  ;;  %v1021_v27 = vadd.f32 1.0, %v1838_v17  ;;  %1865 = vpow2.f32 %v1457_v11 }
 0x124   : > { %v1842_v26 = vpop.eup %1841  ;;  %1632 = vst [vmem:[%s2180_s24 + $0x58] sm:$0xff] %v1600_v21   ;;  %1867 = vrcp.f32 %v1005_v23  ;;  %v1003_v10 = vadd.f32 1.0, %v1840_v0 }
 0x125   : > { %v1844_v29 = vpop.eup %1843  ;;  %1623 = vst [vmem:[%s2180_s24 + $0x10] sm:$0xff] %v1555_v19   ;;  %1869 = vrcp.f32 %v1021_v27  ;;  %v1019_v22 = vadd.f32 1.0, %v1842_v26 }
 0x126   : > { %v1846_v31 = vpop.eup %1845  ;;  %v1112_v35 = vmul.f32 %v1844_v29, %v2105_v30  ;;  %1871 = vrcp.f32 %v1003_v10 }
 0x127   : > { %v1848_v38 = vpop.eup %1847  ;;  %1873 = vrcp.f32 %v1019_v22  ;;  %v1006_v49 = vadd.f32 1.0, %v1846_v31 }
 0x128   : > { %v1850_v39 = vpop.eup %1849  ;;  %v1595_v44 = vpack.c.bf16 %v1112_v35, %v1111_v34  ;;  %v1022_v33 = vadd.f32 1.0, %v1848_v38  ;;  %1875 = vpow2.f32 %v1473_v8 }
 0x129   : > { %v1852_v45 = vpop.eup %1851  ;;  %1877 = vrcp.f32 %v1006_v49  ;;  %v1004_v46 = vadd.f32 1.0, %v1850_v39 }
 0x12a   : > { %v1854_v52 = vpop.eup %1853  ;;  %1631 = vst [vmem:[%s2180_s24 + $0x50] sm:$0xff] %v1595_v44   ;;  %1879 = vrcp.f32 %v1022_v33  ;;  %v1020_v53 = vadd.f32 1.0, %v1852_v45 }
 0x12b   : > { %v1856_v50 = vpop.eup %1855  ;;  %1881 = vrcp.f32 %v1004_v46  ;;  %v1009_v9 = vadd.f32 1.0, %v1854_v52 }
 0x12c   : > { %v1858_v57 = vpop.eup %1857  ;;  %1883 = vrcp.f32 %v1020_v53  ;;  %v1025_v30 = vadd.f32 1.0, %v1856_v50 }
 0x12d   : > { %v1860_v58 = vpop.eup %1859  ;;  %v1007_v40 = vadd.f32 1.0, %v1858_v57  ;;  %1885 = vrcp.f32 %v1009_v9 }
 0x12e   : > { %v1862_v54 = vpop.eup %1861  ;;  %1887 = vrcp.f32 %v1025_v30  ;;  %v1023_v5 = vadd.f32 1.0, %v1860_v58 }
 0x12f   : > { %v1864_v61 = vpop.eup %1863  ;;  %v1010_v41 = vadd.f32 1.0, %v1862_v54  ;;  %1889 = vrcp.f32 %v1007_v40 }
 0x130   : > { %v1866_v62 = vpop.eup %1865  ;;  %v1026_v59 = vadd.f32 1.0, %v1864_v61 }
 0x131   : > { %v1868_v1 = vpop.eup %1867  ;;  %1891 = vrcp.f32 %v1010_v41  ;;  %v1008_v2 = vadd.f32 1.0, %v1866_v62 }
 0x132   : > { %v1870_v4 = vpop.eup %1869  ;;  %1893 = vrcp.f32 %v1026_v59  ;;  %v1101_v15 = vmul.f32 %v1868_v1, %v2111_v51 }
 0x133   : > { %v1872_v6 = vpop.eup %1871  ;;  %1895 = vrcp.f32 %v1008_v2  ;;  %v1117_v18 = vmul.f32 %v1870_v4, %v2114_v55 }
 0x134   : > { %v1874_v7 = vpop.eup %1873  ;;  %1897 = vrcp.f32 %v1023_v5  ;;  %v1099_v23 = vmul.f32 %v1872_v6, %v2126_v28 }
 0x135   : > { %v1876_v11 = vpop.eup %1875  ;;  %v1115_v27 = vmul.f32 %v1874_v7, %v2130_v36 }
 0x136   : > { %v1878_v24 = vpop.eup %1877  ;;  %v1024_v12 = vadd.f32 1.0, %v1876_v11 }
 0x137   : > { %v1880_v13 = vpop.eup %1879  ;;  %v1102_v16 = vmul.f32 %v1878_v24, %v2133_v37 }
 0x138   : > { %v1882_v63 = vpop.eup %1881  ;;  %v1118_v17 = vmul.f32 %v1880_v13, %v2136_v42  ;;  %1899 = vrcp.f32 %v1024_v12 }
 0x139   : > { %v1884_v21 = vpop.eup %1883  ;;  %v1570_v0 = vpack.c.bf16 %v1102_v16, %v1101_v15  ;;  %v1100_v19 = vmul.f32 %v1882_v63, %v2139_v43 }
 0x13a   : > { %v1610_v51 = vpack.c.bf16 %v1118_v17, %v1117_v18  ;;  %v1116_v37 = vmul.f32 %v1884_v21, %v2142_v47  ;;  %v1886_v26 = vpop.eup %1885 }
 0x13b   : > { %1626 = vst [vmem:[%s2180_s24 + $0x28] sm:$0xff] %v1570_v0   ;;  %v1565_v10 = vpack.c.bf16 %v1100_v19, %v1099_v23  ;;  %v1888_v55 = vpop.eup %1887  ;;  %v1105_v43 = vmul.f32 %v1886_v26, %v2145_v48 }
 0x13c   : > { %1634 = vst [vmem:[%s2180_s24 + $0x68] sm:$0xff] %v1610_v51   ;;  %v1605_v42 = vpack.c.bf16 %v1116_v37, %v1115_v27  ;;  %v1890_v8 = vpop.eup %1889  ;;  %v1121_v47 = vmul.f32 %v1888_v55, %v2148_v56 }
 0x13d   : > { %1625 = vst [vmem:[%s2180_s24 + $0x20] sm:$0xff] %v1565_v10   ;;  %v1103_v34 = vmul.f32 %v1890_v8, %v2163_v20 }
 0x13e   : > { %v1892_v29 = vpop.eup %1891  ;;  %1633 = vst [vmem:[%s2180_s24 + $0x60] sm:$0xff] %v1605_v42  }
 0x13f   : > { %v1894_v28 = vpop.eup %1893  ;;  %v1106_v36 = vmul.f32 %v1892_v29, %v2169_v25 }
 0x140   : > { %v1896_v22 = vpop.eup %1895  ;;  %v1122_v31 = vmul.f32 %v1894_v28, %v2184_v32 }
 0x141   : > { %v1580_v35 = vpack.c.bf16 %v1106_v36, %v1105_v43  ;;  %v1104_v38 = vmul.f32 %v1896_v22, %v2193_v60  ;;  %v1898_v39 = vpop.eup %1897 }
 0x142   : > { %v1620_v49 = vpack.c.bf16 %v1122_v31, %v1121_v47  ;;  %v1119_v48 = vmul.f32 %v1898_v39, %v2166_v3 }
 0x143   : > { %1628 = vst [vmem:[%s2180_s24 + $0x38] sm:$0xff] %v1580_v35   ;;  %v1575_v44 = vpack.c.bf16 %v1104_v38, %v1103_v34 }
 0x144   : > { %1636 = vst [vmem:[%s2180_s24 + $0x78] sm:$0xff] %v1620_v49  }
 0x145   : > { %v1900_v33 = vpop.eup %1899  ;;  %1627 = vst [vmem:[%s2180_s24 + $0x30] sm:$0xff] %v1575_v44  }
 0x146   : > { %v1120_v25 = vmul.f32 %v1900_v33, %v2208_v14 }
 0x148   : > { %v1615_v45 = vpack.c.bf16 %v1120_v25, %v1119_v48 }
 0x14a   : > { %1635 = vst [vmem:[%s2180_s24 + $0x70] sm:$0xff] %v1615_v45  }
 0x14b PF: > { %s14_s17 = sadd.s32 1, %s1923_s17   ;;  %s2257_s15 = smov %s1919_s16 }
 0x14c   : > { %p11_p5 = scmp.ge.s32.totalorder %s14_s17, 34   ;;  %s2258_s16 = smov %s2260_s18 }
 0x14e   :  { %13 = sbr.rel (!%p11_p5) target bundleno = 2 (0x2), region = 83 }

</bundles_post_ra>
